<compile_context>
chip_gen: v7x
topology: tpu7x:2x2x1
jax: 0.10.0
libtpu: 0.0.40
codegen_flags: <defaults>
</compile_context>

<pallas_src>
import math
import functools

import jax
import jax.numpy as jnp
from jax.experimental import pallas as pl
from jax.experimental.pallas import tpu as pltpu

_LANE = 128
_SUBLANE = 8


def _pe_add_kernel(x_ref, pe_ref, o_ref):
    # x_ref / o_ref : (TB, TL) block of the flattened (B, S*D) activations
    # pe_ref        : (1, TL)  block of the flattened pe table (broadcast over batch)
    o_ref[...] = (x_ref[...] + pe_ref[...]).astype(o_ref.dtype)


@functools.lru_cache(maxsize=None)
def _default_block_bytes() -> int:
    """Per-generation per-block byte budget (working set ~4x this, double-buffered)."""
    try:
        kind = jax.devices()[0].device_kind.lower()
    except Exception:
        return 2 << 20
    if "v5" in kind:
        return 2 << 20      # v5e: 16 MiB scoped-VMEM default -> stay small
    if "v6" in kind or "v7" in kind or "7x" in kind:
        return 4 << 20      # v6e / v7x: 32 MiB scoped default -> ~16-18 MiB working set
    return 2 << 20          # unknown generation: conservative


@functools.partial(jax.jit, static_argnames=("block_bytes", "donate_x"))
def positional_encoding_forward(x: jax.Array, pe: jax.Array, *,
                                block_bytes: int | None = None,
                                donate_x: bool = False) -> jax.Array:
    """x: (B, S, D); pe: (max_len, D) table  ->  (B, S, D) in x.dtype."""
    B, S, D = x.shape
    max_len, d_model = pe.shape
    assert d_model == D, f"pe d_model {d_model} != x d_model {D}"
    assert S <= max_len, f"sequence length {S} exceeds pe max_len {max_len}"

    if block_bytes is None:
        block_bytes = _default_block_bytes()

    L = S * D                                   # flattened (seq, d_model) lane extent
    itemsize = jnp.dtype(x.dtype).itemsize

    # --- lane tile FIRST: as wide a multiple of 128 as the budget allows -----
    per_row_budget = max(1, block_bytes // (_SUBLANE * itemsize))
    if L <= per_row_budget:
        tl = L                                  # whole flattened row in one lane block
    else:
        tl = max(_LANE, min(per_row_budget, L) // _LANE * _LANE)

    # --- batch tile from the remaining budget: any multiple of 8 <= B --------
    tb_budget = max(_SUBLANE,
                    block_bytes // (tl * itemsize) // _SUBLANE * _SUBLANE)
    tb_budget = min(tb_budget, 256)
    tb = B if B <= tb_budget else tb_budget     # tb < B is a multiple of 8 (ragged OK)

    n_l = pl.cdiv(L, tl)
    n_b = pl.cdiv(B, tb)

    # If everything fit in one block, split the batch so both v7x TensorCores
    # (and the software pipeline) get >= 2 grid steps.
    if n_l == 1 and n_b == 1 and B >= 2 * _SUBLANE:
        tb = (B // 2 + _SUBLANE - 1) // _SUBLANE * _SUBLANE
        n_b = pl.cdiv(B, tb)

    # --- pe view: cast down to x.dtype for low-precision activations, and ----
    # --- slice to the first S rows when the full-buffer index_map trick ------
    # --- can't be used (non-128-multiple lane tile) or a cast is needed. -----
    cast_pe = (jnp.issubdtype(x.dtype, jnp.floating)
               and jnp.dtype(x.dtype).itemsize < jnp.dtype(pe.dtype).itemsize)
    if cast_pe or tl % _LANE != 0:
        pe_in = pe[:S, :].reshape(1, L)
        if cast_pe:
            pe_in = pe_in.astype(x.dtype)       # e.g. bf16 table for bf16 activations
    else:
        # Full pe buffer; the first S rows are addressed via the index_map only.
        pe_in = pe.reshape(1, max_len * D)

    x2d = x.reshape(B, L)                       # contiguous row-major reshape

    # The axis with the most blocks goes first so the leading "parallel" axis
    # carries the multiplicity that megacore shards across TensorCores.
    if n_b >= n_l:
        grid = (n_b, n_l)
        x_map = lambda b, l: (b, l)
        pe_map = lambda b, l: (0, l)
    else:
        grid = (n_l, n_b)
        x_map = lambda l, b: (b, l)
        pe_map = lambda l, b: (0, l)

    call_kwargs = {}
    if donate_x:
        call_kwargs["input_output_aliases"] = {0: 0}   # reuse x2d's HBM for the output

    out2d = pl.pallas_call(
        _pe_add_kernel,
        out_shape=jax.ShapeDtypeStruct((B, L), x.dtype),
        grid=grid,
        in_specs=[
            pl.BlockSpec((tb, tl), x_map),
            pl.BlockSpec((1, tl), pe_map),
        ],
        out_specs=pl.BlockSpec((tb, tl), x_map),
        compiler_params=pltpu.CompilerParams(
            dimension_semantics=("parallel", "parallel"),
        ),
        **call_kwargs,
    )(x2d, pe_in)

    return out2d.reshape(B, S, D)


def make_positional_encoding_buffer(d_model: int, max_len: int = 5000) -> jax.Array:
    """Deterministic construction of the `pe` buffer, matching the PyTorch init."""
    assert d_model % 2 == 0, "d_model must be even (sin/cos interleave requires it)"
    position = jnp.arange(max_len, dtype=jnp.float32)[:, None]            # (max_len, 1)
    div_term = jnp.exp(
        jnp.arange(0, d_model, 2, dtype=jnp.float32)
        * (-math.log(10000.0) / d_model)
    )                                                                      # (d_model/2,)
    angles = position * div_term                                           # (max_len, d_model/2)
    pe = jnp.zeros((max_len, d_model), dtype=jnp.float32)
    pe = pe.at[:, 0::2].set(jnp.sin(angles))
    pe = pe.at[:, 1::2].set(jnp.cos(angles))
    return pe


if __name__ == "__main__":
    max_len = 64  # small max_len for the synthetic test; only the first S rows are used

    # --- Test 1: nominal small shapes (batch=2, seq=8, hidden=32), float32 ---
    B, S, D = 2, 8, 32
    x = jax.random.normal(jax.random.PRNGKey(0), (B, S, D), dtype=jnp.float32)
    pe = make_positional_encoding_buffer(D, max_len)
    out = jax.block_until_ready(positional_encoding_forward(x, pe))
    ref = x + pe[None, :S, :]
    assert out.shape == (B, S, D)
    assert jnp.allclose(out, ref, atol=1e-6), "mismatch vs reference (test 1)"

    # --- Test 2a: non-128-multiple lane extent, single wide block (tl == L) --
    B2, S2, D2 = 2, 8, 40          # L = 320
    x2 = jax.random.normal(jax.random.PRNGKey(1), (B2, S2, D2), dtype=jnp.float32)
    pe2 = make_positional_encoding_buffer(D2, max_len)
    ref2 = x2 + pe2[None, :S2, :]
    out2a = jax.block_until_ready(positional_encoding_forward(x2, pe2))
    assert jnp.allclose(out2a, ref2, atol=1e-6), "mismatch vs reference (test 2a)"

    # --- Test 2b: force a multi-tile, ragged lane grid (tiny block budget) ---
    out2b = jax.block_until_ready(
        positional_encoding_forward(x2, pe2, block_bytes=1024))
    assert jnp.allclose(out2b, ref2, atol=1e-6), "mismatch vs reference (test 2b)"

    # --- Test 3: bf16 activations (wrapper pre-casts the pe slice to bf16) ---
    x3 = x.astype(jnp.bfloat16)
    out3 = jax.block_until_ready(positional_encoding_forward(x3, pe))
    ref3 = (x3.astype(jnp.float32) + pe[None, :S, :]).astype(jnp.bfloat16)
    assert out3.dtype == jnp.bfloat16
    assert jnp.allclose(out3.astype(jnp.float32), ref3.astype(jnp.float32),
                        atol=5e-2), "mismatch vs reference (test 3)"

    # --- Test 4: larger batch -> megacore batch split + ragged batch block, --
    # --- with the output aliased onto x's buffer (input_output_aliases) -----
    B4 = 18
    x4 = jax.random.normal(jax.random.PRNGKey(2), (B4, S, D), dtype=jnp.float32)
    ref4 = x4 + pe[None, :S, :]
    out4 = jax.block_until_ready(
        positional_encoding_forward(x4, pe, donate_x=True))
    assert jnp.allclose(out4, ref4, atol=1e-6), "mismatch vs reference (test 4)"

    print("KERNEL_OK")
</pallas_src>

<mosaic_0001>
module attributes {stable_mosaic.version = 11 : i64} {
  func.func @_pe_add_kernel(%arg0: i32, %arg1: i32, %arg2: memref<2x256xf32, #tpu.memory_space<vmem>>, %arg3: memref<1x256xf32, #tpu.memory_space<vmem>>, %arg4: memref<2x256xf32, #tpu.memory_space<vmem>>) attributes {dimension_semantics = [#tpu.dimension_semantics<parallel>, #tpu.dimension_semantics<parallel>], iteration_bounds = array<i64: 1, 1>, scalar_prefetch = 0 : i64, scratch_operands = 0 : i64, tpu.core_type = #tpu.core_type<tc>, window_params = [{transform_indices = @transform_0, window_bounds = array<i64: 2, 256>}, {transform_indices = @transform_1, window_bounds = array<i64: 1, 256>}, {transform_indices = @transform_2, window_bounds = array<i64: 2, 256>}]} {
    %c0 = arith.constant 0 : index
    %c0_0 = arith.constant 0 : index
    %0 = vector.load %arg2[%c0, %c0_0] : memref<2x256xf32, #tpu.memory_space<vmem>>, vector<2x256xf32>
    %c0_1 = arith.constant 0 : index
    %c0_2 = arith.constant 0 : index
    %1 = vector.load %arg3[%c0_1, %c0_2] : memref<1x256xf32, #tpu.memory_space<vmem>>, vector<1x256xf32>
    %2 = vector.broadcast %1 : vector<1x256xf32> to vector<2x256xf32>
    %3 = arith.addf %0, %2 : vector<2x256xf32>
    %c0_3 = arith.constant 0 : index
    %c0_4 = arith.constant 0 : index
    %4 = vector.load %arg4[%c0_3, %c0_4] : memref<2x256xf32, #tpu.memory_space<vmem>>, vector<2x256xf32>
    tpu.vector_store %arg4[%c0_3, %c0_4], %3 {strides = array<i32>} : memref<2x256xf32, #tpu.memory_space<vmem>>, vector<2x256xf32>,
    return
  }
  func.func @transform_0(%arg0: i32, %arg1: i32) -> (i32, i32) {
    %c0_i32 = arith.constant 0 : i32
    return %arg0, %arg1 : i32, i32
  }
  func.func @transform_1(%arg0: i32, %arg1: i32) -> (i32, i32) {
    %c0_i32 = arith.constant 0 : i32
    %c0_i32_0 = arith.constant 0 : i32
    return %c0_i32, %arg1 : i32, i32
  }
  func.func @transform_2(%arg0: i32, %arg1: i32) -> (i32, i32) {
    %c0_i32 = arith.constant 0 : i32
    return %arg0, %arg1 : i32, i32
  }
}

</mosaic_0001>

<bundles_post_ra>
// kernel: positional_encoding_forward.1
= control target key start
LH: loop header
LB: loop body
LE: loop exit
PB: predicated region body
PF: predicated region fallthrough
CT: control target
= control target key end

     0   :  { %v14_v0 = vlaneseq  ;;  %v38_v1 = vmov 1983009808   ;;  %s63_s1 = inlined_call_operand.vmem [shape: f32[1,2048], index: 1, kind: input, shape index: {}]   ;;  %s64_s0 = inlined_call_operand.vmem [shape: f32[2,256], index: 0, kind: input, shape index: {}]   ;;  %s65_s2 = inlined_call_operand.vmem [shape: f32[2,256], index: 2, kind: output, shape index: {}]  }
   0x1   :  { %v24_v2 = vunpack.c.l.s4 %v38_v1  ;;  %v12_v4 = vld [vmem:[%s63_s1] sm:$0x3] }
   0x2   :  { %v15_v3 = vshrl.u32 %v14_v0, 7  ;;  %v11_v12 = vld [vmem:[%s64_s0] sm:$0xf] }
   0x3   :  { %v25_v5 = vunpack.c.0.s8 %v24_v2 }
   0x4   :  { %v16_v6 = vsub.s32 0, %v15_v3  ;;  %v20_v7 = vsub.s32 1, %v15_v3 }
   0x5   :  { %v28_v10 = vsub.s32 %v25_v5, %v15_v3 }
   0x6   :  { %v17_v8 = vrot.slane %v12_v4, %v16_v6  ;;  %v21_v9 = vrot.slane %v12_v4, %v20_v7 }
   0x8   :  { %v22_v11 = vcombine.low %v17_v8, %v21_v9 }
   0xa   :  { %v29_v13 = vrot.slane %v22_v11, %v28_v10 }
   0xc   :  { %v31_v14 = vadd.f32 %v29_v13, %v11_v12 }
   0xe   :  { %32 = vst [vmem:[%s65_s2] sm:$0xf] %v31_v14 }

</bundles_post_ra>
